<compile_context>
chip_gen: v5e
topology: v5e:2x2
jax: 0.10.0
libtpu: 0.0.40
codegen_flags: <defaults>
</compile_context>

<pallas_src>
import math

import jax
import jax.numpy as jnp
from jax.experimental import pallas as pl
from jax.experimental.pallas import tpu as pltpu


def _round_up(x: int, m: int) -> int:
    return ((x + m - 1) // m) * m


def _padded_block_bytes(rows: int, cols: int, itemsize: int) -> int:
    # VMEM footprint of a (rows, cols) block after (8, 128) tiling/padding.
    return _round_up(max(rows, 1), 8) * _round_up(max(cols, 1), 128) * itemsize


def _device_tile_params():
    """(row-tile target, number of TensorCores) per TPU generation."""
    try:
        kind = jax.devices()[0].device_kind.lower()
    except Exception:  # pragma: no cover - defensive
        kind = ""
    if "v5" in kind:
        return 2048, 1          # 16 MiB scoped-VMEM default, 1 TC
    if "v7" in kind:
        return 4096, 2          # 64 MiB physical VMEM, 2 TCs
    return 4096, 1              # v6e / default


def _x_block_kernel(y_ref, z_ref, d_ref, wt_ref, bt_ref, o_ref):
    # y_ref: (tm, L); z_ref/d_ref: (tm, p); wt_ref: (L, p); bt_ref: (p, p)
    acc = jnp.dot(y_ref[...], wt_ref[...], preferred_element_type=jnp.float32)
    acc = acc + jnp.dot(z_ref[...] + d_ref[...], bt_ref[...],
                        preferred_element_type=jnp.float32)
    o_ref[...] = acc.astype(o_ref.dtype)


def x_block(y, z, d, w_weight, b_weight, *, activation_dtype=None):
    """out = y @ w_weight.T + (z + d) @ b_weight.T

    y: (..., L); z, d: (..., p); w_weight: (p, L); b_weight: (p, p).
    Returns (..., p) in y.dtype.
    """
    L = y.shape[-1]
    p = b_weight.shape[0]
    assert w_weight.shape == (p, L), (w_weight.shape, (p, L))
    assert b_weight.shape == (p, p), (b_weight.shape, (p, p))
    assert z.shape == d.shape and z.shape[-1] == p
    assert y.shape[:-1] == z.shape[:-1]

    batch_shape = y.shape[:-1]
    M = math.prod(batch_shape) if batch_shape else 1

    out_dtype = y.dtype
    act_dtype = out_dtype if activation_dtype is None else activation_dtype

    y2 = y.reshape(M, L).astype(act_dtype)
    z2 = z.reshape(M, p).astype(act_dtype)
    d2 = d.reshape(M, p).astype(act_dtype)
    wt = jnp.transpose(w_weight).astype(act_dtype)  # (L, p), resident
    bt = jnp.transpose(b_weight).astype(act_dtype)  # (p, p), resident

    # ---- Row-tile selection (generation aware, lane-padded VMEM budget). ----
    tm_target, n_cores = _device_tile_params()
    if n_cores > 1 and M > 512:
        # Guarantee >= n_cores grid steps so every TensorCore gets work.
        per_core = _round_up(pl.cdiv(M, n_cores), 256)
        tm_target = max(256, min(tm_target, per_core))

    if M <= tm_target:
        tm = M                      # single block == full dim (always legal)
    else:
        tm = tm_target              # multiple of 256 -> (8,128)-compatible
    grid_m = pl.cdiv(M, tm)         # ragged last tile handled by Pallas

    # ---- Explicit scoped-VMEM budget from the lane-padded footprint. ----
    itemsize = jnp.dtype(act_dtype).itemsize
    out_itemsize = jnp.dtype(out_dtype).itemsize
    step_bytes = (_padded_block_bytes(tm, L, itemsize)
                  + 2 * _padded_block_bytes(tm, p, itemsize)
                  + _padded_block_bytes(tm, p, out_itemsize))
    weight_bytes = (_padded_block_bytes(L, p, itemsize)
                    + _padded_block_bytes(p, p, itemsize))
    vmem_limit = 2 * step_bytes + 2 * weight_bytes + (4 << 20)  # dbl-buffer + headroom
    vmem_limit = int(min(max(vmem_limit, 8 << 20), 48 << 20))

    # ---- Scheduling hint for XLA around the custom call. ----
    flops = 2 * M * L * p + 2 * M * p * p + M * p
    bytes_accessed = (M * L + 2 * M * p + L * p + p * p) * itemsize + M * p * out_itemsize
    cost = pl.CostEstimate(flops=flops, transcendentals=0,
                           bytes_accessed=bytes_accessed)

    out = pl.pallas_call(
        _x_block_kernel,
        out_shape=jax.ShapeDtypeStruct((M, p), out_dtype),
        grid_spec=pltpu.PrefetchScalarGridSpec(
            num_scalar_prefetch=0,
            grid=(grid_m,),
            in_specs=[
                pl.BlockSpec((tm, L), lambda i: (i, 0)),   # y rows
                pl.BlockSpec((tm, p), lambda i: (i, 0)),   # z rows
                pl.BlockSpec((tm, p), lambda i: (i, 0)),   # d rows
                pl.BlockSpec((L, p), lambda i: (0, 0)),    # W^T (resident)
                pl.BlockSpec((p, p), lambda i: (0, 0)),    # B^T (resident)
            ],
            out_specs=pl.BlockSpec((tm, p), lambda i: (i, 0)),
        ),
        compiler_params=pltpu.CompilerParams(
            dimension_semantics=("parallel",),
            vmem_limit_bytes=vmem_limit,
        ),
        cost_estimate=cost,
    )(y2, z2, d2, wt, bt)

    return out.reshape(*batch_shape, p)


if __name__ == "__main__":
    key = jax.random.PRNGKey(0)
    ka, ky, kz, kd = jax.random.split(key, 4)

    # Small shapes consistent with the module: batch=2, seq=8, L=32, p=16.
    B, S, L, p = 2, 8, 32, 16
    mu = 0.5

    y = jax.random.normal(ky, (B, S, L), dtype=jnp.float32)
    z = jax.random.normal(kz, (B, S, p), dtype=jnp.float32)
    d = jax.random.normal(kd, (B, S, p), dtype=jnp.float32)

    # Deterministic parameter init, matching the PyTorch constructor:
    #   M = A^T A + mu I ; W.weight = solve(M, A^T) ; B.weight = solve(M, mu I)
    A_init = jax.random.normal(ka, (L, p), dtype=jnp.float32)
    eye_p = jnp.eye(p, dtype=jnp.float32)
    M_mat = A_init.T @ A_init + mu * eye_p
    w_weight = jnp.linalg.solve(M_mat, A_init.T)       # (p, L)
    b_weight = jnp.linalg.solve(M_mat, mu * eye_p)      # (p, p)

    out = x_block(y, z, d, w_weight, b_weight)
    out = jax.block_until_ready(out)

    # Reference check (plain JAX).
    ref = y @ w_weight.T + (z + d) @ b_weight.T
    assert out.shape == ref.shape, (out.shape, ref.shape)
    assert jnp.allclose(out, ref, atol=1e-4, rtol=1e-4), "mismatch vs reference"

    print("KERNEL_OK")
</pallas_src>

<mosaic_0001>
module attributes {stable_mosaic.version = 11 : i64} {
  func.func @_x_block_kernel(%arg0: i32, %arg1: memref<16x32xf32, #tpu.memory_space<vmem>>, %arg2: memref<16x16xf32, #tpu.memory_space<vmem>>, %arg3: memref<16x16xf32, #tpu.memory_space<vmem>>, %arg4: memref<32x16xf32, #tpu.memory_space<vmem>>, %arg5: memref<16x16xf32, #tpu.memory_space<vmem>>, %arg6: memref<16x16xf32, #tpu.memory_space<vmem>>) attributes {dimension_semantics = [#tpu.dimension_semantics<parallel>], iteration_bounds = array<i64: 1>, scalar_prefetch = 0 : i64, scratch_operands = 0 : i64, tpu.core_type = #tpu.core_type<tc>, window_params = [{transform_indices = @transform_0, window_bounds = array<i64: 16, 32>}, {transform_indices = @transform_1, window_bounds = array<i64: 16, 16>}, {transform_indices = @transform_2, window_bounds = array<i64: 16, 16>}, {pipeline_mode = #tpu.pipeline_mode<synchronous>, transform_indices = @transform_3, window_bounds = array<i64: 32, 16>}, {pipeline_mode = #tpu.pipeline_mode<synchronous>, transform_indices = @transform_4, window_bounds = array<i64: 16, 16>}, {transform_indices = @transform_5, window_bounds = array<i64: 16, 16>}]} {
    %c0 = arith.constant 0 : index
    %c0_0 = arith.constant 0 : index
    %0 = vector.load %arg1[%c0, %c0_0] : memref<16x32xf32, #tpu.memory_space<vmem>>, vector<16x32xf32>
    %c0_1 = arith.constant 0 : index
    %c0_2 = arith.constant 0 : index
    %1 = vector.load %arg4[%c0_1, %c0_2] : memref<32x16xf32, #tpu.memory_space<vmem>>, vector<32x16xf32>
    %cst = arith.constant dense<0.000000e+00> : vector<16x16xf32>
    %2 = tpu.matmul %0, %1, %cst {dimension_numbers = #tpu.dot_dimension_numbers<[1], [0], [0], [1], [0, 0, 1, 1], [], []>} : vector<16x32xf32>, vector<32x16xf32>, vector<16x16xf32> -> vector<16x16xf32>
    %c0_3 = arith.constant 0 : index
    %c0_4 = arith.constant 0 : index
    %3 = vector.load %arg2[%c0_3, %c0_4] : memref<16x16xf32, #tpu.memory_space<vmem>>, vector<16x16xf32>
    %c0_5 = arith.constant 0 : index
    %c0_6 = arith.constant 0 : index
    %4 = vector.load %arg3[%c0_5, %c0_6] : memref<16x16xf32, #tpu.memory_space<vmem>>, vector<16x16xf32>
    %5 = arith.addf %3, %4 : vector<16x16xf32>
    %c0_7 = arith.constant 0 : index
    %c0_8 = arith.constant 0 : index
    %6 = vector.load %arg5[%c0_7, %c0_8] : memref<16x16xf32, #tpu.memory_space<vmem>>, vector<16x16xf32>
    %cst_9 = arith.constant dense<0.000000e+00> : vector<16x16xf32>
    %7 = tpu.matmul %5, %6, %cst_9 {dimension_numbers = #tpu.dot_dimension_numbers<[1], [0], [0], [1], [0, 0, 1, 1], [], []>} : vector<16x16xf32>, vector<16x16xf32>, vector<16x16xf32> -> vector<16x16xf32>
    %8 = arith.addf %2, %7 : vector<16x16xf32>
    %c0_10 = arith.constant 0 : index
    %c0_11 = arith.constant 0 : index
    %9 = vector.load %arg6[%c0_10, %c0_11] : memref<16x16xf32, #tpu.memory_space<vmem>>, vector<16x16xf32>
    tpu.vector_store %arg6[%c0_10, %c0_11], %8 {strides = array<i32>} : memref<16x16xf32, #tpu.memory_space<vmem>>, vector<16x16xf32>,
    return
  }
  func.func @transform_0(%arg0: i32) -> (i32, i32) {
    %c0_i32 = arith.constant 0 : i32
    %c0_i32_0 = arith.constant 0 : i32
    return %arg0, %c0_i32 : i32, i32
  }
  func.func @transform_1(%arg0: i32) -> (i32, i32) {
    %c0_i32 = arith.constant 0 : i32
    %c0_i32_0 = arith.constant 0 : i32
    return %arg0, %c0_i32 : i32, i32
  }
  func.func @transform_2(%arg0: i32) -> (i32, i32) {
    %c0_i32 = arith.constant 0 : i32
    %c0_i32_0 = arith.constant 0 : i32
    return %arg0, %c0_i32 : i32, i32
  }
  func.func @transform_3(%arg0: i32) -> (i32, i32) {
    %c0_i32 = arith.constant 0 : i32
    %c0_i32_0 = arith.constant 0 : i32
    %c0_i32_1 = arith.constant 0 : i32
    return %c0_i32, %c0_i32_0 : i32, i32
  }
  func.func @transform_4(%arg0: i32) -> (i32, i32) {
    %c0_i32 = arith.constant 0 : i32
    %c0_i32_0 = arith.constant 0 : i32
    %c0_i32_1 = arith.constant 0 : i32
    return %c0_i32, %c0_i32_0 : i32, i32
  }
  func.func @transform_5(%arg0: i32) -> (i32, i32) {
    %c0_i32 = arith.constant 0 : i32
    %c0_i32_0 = arith.constant 0 : i32
    return %arg0, %c0_i32 : i32, i32
  }
}

</mosaic_0001>

<bundles_post_ra>
// kernel: tpu_custom_call.1
= control target key start
LH: loop header
LB: loop body
LE: loop exit
PB: predicated region body
PF: predicated region fallthrough
CT: control target
= control target key end

     0   :  { %10 = vsyncpa [#allocation3], 0  ;;  %s278_s0 = inlined_call_operand.vmem [shape: f32[16,32], index: 0, kind: input, shape index: {}]   ;;  %s279_s1 = inlined_call_operand.vmem [shape: f32[16,16], index: 1, kind: input, shape index: {}]   ;;  %s280_s2 = inlined_call_operand.vmem [shape: f32[16,16], index: 2, kind: input, shape index: {}]   ;;  %s281_s3 = inlined_call_operand.vmem [shape: f32[32,16], index: 3, kind: input, shape index: {}]   ;;  %s282_s4 = inlined_call_operand.hbm [shape: f32[16,16], index: 4, kind: input, shape index: {}]   ;;  %s283_s5 = inlined_call_operand.hbm [shape: f32[16,16], index: 5, kind: output, shape index: {}]  }
   0x1   :  { %11 = vsyncpa [#allocation4], 0  ;;  %s24_s20 = sshll.u32 %s282_s4, 4  ;;  %s198_s21 = smov [#allocation2]   ;;  %s25_s20 = int_to_ptr.hbm [resolvable:$true] %s24_s20 }
   0x2   :  { %s26_s22 = sshll.u32 %s198_s21, 4  ;;  %s199_s23 = smov 128   ;;  %s27_s22 = int_to_ptr.vmem [resolvable:$true] %s26_s22 }
   0x3   :  { %s200_s24 = smov 8  }
   0x4   :  { %32 = dma.hbm_to_vmem [thread:$0]  %s25_s20, 256, %s27_s22, [#allocation3], %s199_s23, %s199_s23, %s200_s24  }
   0x5   :  { %194 = dma.done.wait [#allocation3], 256  }
   0x6   :  { %195 = vsyncadd [#allocation3], 4294967040  ;;  %v42_v0 = vld [vmem:[%s281_s3 + $0x18] sm:$0xff]  ;;  %v41_v1 = vld [vmem:[%s281_s3 + $0x10] sm:$0xff]  ;;  %vm51_vm0 = vcmask 130048   ;;  %vm81_vm1 = vcmask 261120  }
   0x7   :  { %v50_v2 = vld [vmem:[#allocation2 + $0x8] sm:$0xff]  ;;  %138 = vmatpush.msra.mxu2 %v42_v0  ;;  %v49_v3 = vld [vmem:[#allocation2] sm:$0xff]  ;;  %100 = vmatpush.msra.mxu1 %v42_v0  ;;  %s119_s20 = sshll.u32 %s283_s5, 4  ;;  %s120_s20 = int_to_ptr.hbm [resolvable:$true] %s119_s20 }
   0x8   :  { %136 = vmatpush.msra.mxu3 %v50_v2  ;;  %v40_v4 = vld [vmem:[%s281_s3 + $0x8] sm:$0xff]  ;;  %72 = vmatpush.msra.mxu0 %v50_v2  ;;  %v43_v8 = vld [vmem:[%s279_s1] sm:$0xff] }
   0x9   :  { %v44_v5 = vld [vmem:[%s279_s1 + $0x8] sm:$0xff]  ;;  %139 = vmatpush.msra.mxu2 %v41_v1  ;;  %v45_v9 = vld [vmem:[%s280_s2] sm:$0xff]  ;;  %101 = vmatpush.msra.mxu1 %v41_v1 }
   0xa   :  { %v46_v6 = vld [vmem:[%s280_s2 + $0x8] sm:$0xff]  ;;  %137 = vmatpush.msra.mxu3 %v49_v3  ;;  %v39_v10 = vld [vmem:[%s281_s3] sm:$0xff]  ;;  %73 = vmatpush.msra.mxu0 %v49_v3  ;;  %v47_v11 = vadd.f32 %v45_v9, %v43_v8  ;;  %s201_s3 = smov [#allocation5]  }
   0xb   :  { %v48_v7 = vadd.f32 %v46_v6, %v44_v5  ;;  %140 = vmatpush.msra.mxu2 %v40_v4  ;;  %v38_v12 = vld [vmem:[%s278_s0 + $0x8] sm:$0xff]  ;;  %102 = vmatpush.msra.mxu1 %v40_v4  ;;  %v37_v13 = vld [vmem:[%s278_s0] sm:$0xff]  ;;  %s117_s17 = sshll.u32 %s201_s3, 4  ;;  %s118_s17 = int_to_ptr.vmem [resolvable:$true] %s117_s17 }
   0xc   :  { %132 = vmatmul.msk.f32.vlgmr.msra.gmra.mxu0 %vm51_vm0, %v47_v11 }
   0xd   :  { %133 = vmatmul.msk.f32.vlgmr.msra.gmra.mxu3 %vm51_vm0, %v48_v7  ;;  %141 = vmatpush.msra.mxu2 %v39_v10 }
   0xe   :  { %135 = vmatmul.msk.f32.vlgmr.msra.gmra.mxu2 %vm81_vm1, %v38_v12  ;;  %103 = vmatpush.msra.mxu1 %v39_v10 }
   0xf   :  { %134 = vmatmul.msk.f32.vlgmr.msra.gmra.mxu1 %vm81_vm1, %v37_v13 }
  0x89   :  { %v75_v14 = vpop.f32.mrf.mxu0 }
  0x8c   :  { %v105_v15 = vpop.f32.mrf.mxu1 }
  0x8d   :  { %v106_v16 = vadd.f32 %v105_v15, %v75_v14 }
  0x8f   :  { %111 = vst.msk [vmem:[#allocation5] sm:$0xff] %vm51_vm0, %v106_v16 }
  0x90   :  { %v78_v17 = vpop.f32.mrf.mxu3 }
  0x91   :  { %v108_v18 = vpop.f32.mrf.mxu2 }
  0x92   :  { %v109_v19 = vadd.f32 %v108_v18, %v78_v17 }
  0x94   :  { %112 = vst.msk [vmem:[#allocation5 + $0x8] sm:$0xff] %vm51_vm0, %v109_v19 }
  0x95   :  { %125 = dma.vmem_to_hbm [thread:$0]  %s118_s17, 256, %s120_s20, [#allocation4], %s199_s23, %s199_s23, %s200_s24  }
  0x96   :  { %196 = dma.done.wait [#allocation4], 256  }
  0x97   :  { %197 = vsyncadd [#allocation4], 4294967040 }
  0x98   :  { %130 = vsyncpa [#allocation3], 1 }
  0x99   :  { %131 = vsyncpa [#allocation4], 1 }

</bundles_post_ra>
